<compile_context>
chip_gen: v7x
topology: tpu7x:2x2x1
jax: 0.10.0
libtpu: 0.0.40
codegen_flags: <defaults>
</compile_context>

<pallas_src>
import functools

import jax
import jax.numpy as jnp
from jax.experimental import pallas as pl
from jax.experimental.pallas import tpu as pltpu


def _round_up(x, m):
    return (x + m - 1) // m * m


def _matmul_kernel(x_ref, w_ref, o_ref):
    """One grid step: o = x @ w with f32 MXU accumulation.

    x_ref: [m_blk, K_pad]   im2col'd activation rows (lane-aligned K)
    w_ref: [K_pad, N_pad]   folded conv weights (same block every step)
    o_ref: [m_blk, N_pad]   lane/sublane-dense output slab
    """
    o_ref[...] = jnp.dot(x_ref[...], w_ref[...],
                         preferred_element_type=jnp.float32).astype(o_ref.dtype)


def _vmem_capacity_bytes(default=64 * 1024 * 1024):
    """Physical VMEM of the current chip (conservative 64 MiB fallback = v7x)."""
    try:
        info = pltpu.get_tpu_info()
        for attr in ("vmem_capacity_bytes", "vmem_size_bytes", "vmem_bytes"):
            val = getattr(info, attr, None)
            if val:
                return int(val)
    except Exception:
        pass
    return default


def _choose_m_block(m_rows, k_pad, n_pad, lhs_itemsize, out_itemsize,
                    rhs_bytes, vmem_budget, max_m_block=2048):
    """Largest multiple-of-8 row block whose double-buffered LHS/OUT blocks plus
    the (double-buffered) resident RHS stay inside the VMEM budget."""
    per_row = 2 * (k_pad * lhs_itemsize + n_pad * out_itemsize)
    avail = max(vmem_budget - 2 * rhs_bytes, 8 * per_row)
    m_fit = max((avail // per_row) // 8 * 8, 8)
    m_blk = int(min(_round_up(m_rows, 8), m_fit, max_m_block))
    # Prefer >= 2 grid steps (v7x megacore sharding) once blocks are comfortably big.
    if m_blk >= m_rows and m_rows >= 512:
        m_blk = _round_up(-(-m_rows // 2), 8)
    return m_blk


def _build_banded_weight(weight, w_out, w_pad):
    """weight [Co, Ci, KH, KW] -> band2d [KH*Wp*Ci, Wo*Co]  (single einsum).

    band[kh, (wo+kw)*Ci + ci, wo*Co + co] = weight[co, ci, kh, kw]: the width
    taps of the stride-1 conv are folded into a block-banded matmul RHS so the
    output lane dim is Wo*Co (lane-dense even when Co is small)."""
    c_out, c_in, kh, kw = weight.shape
    w_t = jnp.transpose(weight, (2, 3, 1, 0))                  # [KH, KW, Ci, Co]
    sel = (jnp.arange(w_pad)[None, :, None]
           == jnp.arange(w_out)[None, None, :] + jnp.arange(kw)[:, None, None])
    band = jnp.einsum("jpq,hjio->hpiqo", sel.astype(weight.dtype), w_t)
    return band.reshape(kh * w_pad * c_in, w_out * c_out)


def _build_dense_weight(weight):
    """weight [Co, Ci, KH, KW] -> [KH*KW*Ci, Co]  (true im2col RHS, no zeros)."""
    c_out, c_in, kh, kw = weight.shape
    return jnp.transpose(weight, (2, 3, 1, 0)).reshape(kh * kw * c_in, c_out)


@functools.partial(jax.jit, static_argnames=("halving", "padding", "compute_dtype"))
def focal_conv2d(x, weight, *, halving, padding=0, compute_dtype=None):
    """x: [N, Ci, H, W] (NCHW), weight: [Co, Ci, KH, KW] -> [N, Co, H_out, W_out]."""
    # TODO(synk): stride != 1, dilation and groups of nn.Conv2d are not implemented
    # (GaitPart's FocalConv2d uses stride=1, no dilation/groups).
    n, c_in, h, w = x.shape
    c_out, c_in_w, kh, kw = weight.shape
    assert c_in == c_in_w
    s = 2 ** halving if halving > 0 else 1
    # TODO(synk): PyTorch's split() allows a ragged last strip; we require an even
    # split (always true for GaitPart's power-of-two feature heights).
    assert h % s == 0, "height must be divisible by 2**halving"
    strip_h = h // s
    hp = strip_h + 2 * padding
    wp = w + 2 * padding
    ho = hp - kh + 1
    wo = wp - kw + 1
    assert ho > 0 and wo > 0
    b_eff = n * s

    in_dtype = x.dtype
    mm_dtype = jnp.dtype(compute_dtype) if compute_dtype is not None else jnp.dtype(in_dtype)

    # ---- layout glue (fused under jit): NCHW -> per-strip effective batch,
    #      channels-last, per-strip zero padding. ----
    xs = x.reshape(n, c_in, s, strip_h, w)
    xs = jnp.transpose(xs, (0, 2, 3, 4, 1)).reshape(b_eff, strip_h, w, c_in)
    xs = jnp.pad(xs, ((0, 0), (padding, padding), (padding, padding), (0, 0)))
    # xs: [b_eff, Hp, Wp, Ci]

    use_dense = c_out >= 128   # Co fills the lanes -> drop the banded (zero-padded) RHS
    if use_dense:
        # Full im2col: M = (b_eff, Ho, Wo) positions, K = KH*KW*Ci, N = Co.
        cols = [xs[:, ih:ih + ho, iw:iw + wo, :]
                for ih in range(kh) for iw in range(kw)]
        lhs = jnp.stack(cols, axis=3).reshape(b_eff * ho * wo, kh * kw * c_in)
        rhs = _build_dense_weight(weight)
        m_rows, k_dim, n_dim = b_eff * ho * wo, kh * kw * c_in, c_out
    else:
        # Height im2col (KH folded into K) + width-banded RHS (lane-dense N = Wo*Co).
        x_k = xs.reshape(b_eff, hp, wp * c_in)
        lhs = jnp.concatenate([x_k[:, ih:ih + ho, :] for ih in range(kh)],
                              axis=-1).reshape(b_eff * ho, kh * wp * c_in)
        rhs = _build_banded_weight(weight, wo, wp)
        m_rows, k_dim, n_dim = b_eff * ho, kh * wp * c_in, wo * c_out

    lhs = lhs.astype(mm_dtype)
    rhs = rhs.astype(mm_dtype)

    # ---- pad K / N to lane multiples (aligned, unmasked loads/stores); choose the
    #      M block from the VMEM budget, counting the resident (double-buffered) RHS. ----
    k_pad = _round_up(k_dim, 128)
    n_pad = _round_up(n_dim, 128)
    lhs_isz = jnp.dtype(mm_dtype).itemsize
    out_isz = jnp.dtype(in_dtype).itemsize
    rhs_bytes = k_pad * n_pad * lhs_isz

    vmem_cap = _vmem_capacity_bytes()
    m_blk = _choose_m_block(m_rows, k_pad, n_pad, lhs_isz, out_isz,
                            rhs_bytes, vmem_budget=vmem_cap // 2)
    m_pad = _round_up(m_rows, m_blk)
    grid = (m_pad // m_blk,)

    lhs = jnp.pad(lhs, ((0, m_pad - m_rows), (0, k_pad - k_dim)))
    rhs = jnp.pad(rhs, ((0, k_pad - k_dim), (0, n_pad - n_dim)))

    # TODO(synk): no K/N blocking — for shapes where the folded RHS alone exceeds the
    # VMEM budget a K- or N-tiled grid axis would be needed (not the GaitPart regime).

    flops = 2 * b_eff * kh * kw * ho * wo * c_in * c_out        # true conv FLOPs
    bytes_accessed = int(lhs.size * lhs_isz + rhs.size * lhs_isz
                         + m_pad * n_pad * out_isz)
    vmem_used = 2 * (m_blk * k_pad * lhs_isz + m_blk * n_pad * out_isz) + 2 * rhs_bytes
    vmem_limit = int(min(int(vmem_cap * 0.9),
                         max(vmem_used * 3 // 2, 32 * 1024 * 1024)))

    out2d = pl.pallas_call(
        _matmul_kernel,
        out_shape=jax.ShapeDtypeStruct((m_pad, n_pad), in_dtype),
        grid_spec=pltpu.PrefetchScalarGridSpec(
            num_scalar_prefetch=0,
            grid=grid,
            in_specs=[
                pl.BlockSpec((m_blk, k_pad), lambda i: (i, 0)),
                pl.BlockSpec((k_pad, n_pad), lambda i: (0, 0)),
            ],
            out_specs=pl.BlockSpec((m_blk, n_pad), lambda i: (i, 0)),
        ),
        compiler_params=pltpu.CompilerParams(
            dimension_semantics=("parallel",),
            vmem_limit_bytes=vmem_limit,
        ),
        cost_estimate=pl.CostEstimate(
            flops=flops, transcendentals=0, bytes_accessed=bytes_accessed),
    )(lhs, rhs)

    # ---- layout glue back to PyTorch NCHW, strips concatenated along H. ----
    out2d = out2d[:m_rows, :n_dim]
    out = out2d.reshape(n, s, ho, wo, c_out)
    out = jnp.transpose(out, (0, 4, 1, 2, 3)).reshape(n, c_out, s * ho, wo)
    return out


def _focal_conv2d_ref(x, weight, *, halving, padding=0):
    """Pure-JAX reference matching the PyTorch FocalConv2d forward."""
    s = 2 ** halving if halving > 0 else 1
    strips = jnp.split(x, s, axis=2) if s > 1 else [x]
    pads = ((padding, padding), (padding, padding))
    outs = [
        jax.lax.conv_general_dilated(
            z, weight, window_strides=(1, 1), padding=pads,
            dimension_numbers=("NCHW", "OIHW", "NCHW"),
            precision=jax.lax.Precision.HIGHEST)
        for z in strips
    ]
    return jnp.concatenate(outs, axis=2)


if __name__ == "__main__":
    key = jax.random.PRNGKey(0)
    kx, kw_, kx2, kw2 = jax.random.split(key, 4)

    # --- small-Co config (banded-weight path, lane-dense N = Wo*Co = 128) ---
    n, c_in, c_out, h, w = 2, 4, 8, 16, 16
    ksize, padding, halving = 3, 1, 2          # 2**2 = 4 horizontal strips
    x = jax.random.normal(kx, (n, c_in, h, w), dtype=jnp.float32)
    weight = 0.1 * jax.random.normal(
        kw_, (c_out, c_in, ksize, ksize), dtype=jnp.float32)

    # halving > 0 path (per-strip conv + concat along H).
    out = jax.block_until_ready(
        focal_conv2d(x, weight, halving=halving, padding=padding))
    assert out.shape == (n, c_out, h, w), out.shape
    ref = _focal_conv2d_ref(x, weight, halving=halving, padding=padding)
    assert jnp.allclose(out, ref, atol=1e-4, rtol=1e-4)

    # halving == 0 path (plain conv over the full height).
    out0 = jax.block_until_ready(
        focal_conv2d(x, weight, halving=0, padding=padding))
    assert out0.shape == (n, c_out, h, w), out0.shape
    ref0 = _focal_conv2d_ref(x, weight, halving=0, padding=padding)
    assert jnp.allclose(out0, ref0, atol=1e-4, rtol=1e-4)

    # bf16 MXU operands with f32 accumulation (looser tolerance vs HIGHEST-f32 ref).
    out_bf = jax.block_until_ready(
        focal_conv2d(x, weight, halving=halving, padding=padding,
                     compute_dtype=jnp.bfloat16))
    assert out_bf.shape == (n, c_out, h, w), out_bf.shape
    assert jnp.allclose(out_bf, ref, atol=5e-2, rtol=5e-2)

    # --- large-Co config (dense im2col path, N = Co = 128, no structural zeros) ---
    n2, c_in2, c_out2, h2, w2 = 2, 4, 128, 8, 8
    x2 = jax.random.normal(kx2, (n2, c_in2, h2, w2), dtype=jnp.float32)
    weight2 = 0.1 * jax.random.normal(
        kw2, (c_out2, c_in2, ksize, ksize), dtype=jnp.float32)
    out2 = jax.block_until_ready(
        focal_conv2d(x2, weight2, halving=1, padding=padding))
    assert out2.shape == (n2, c_out2, h2, w2), out2.shape
    ref2 = _focal_conv2d_ref(x2, weight2, halving=1, padding=padding)
    assert jnp.allclose(out2, ref2, atol=1e-4, rtol=1e-4)

    print("KERNEL_OK")
</pallas_src>

<mosaic_0001>
module attributes {stable_mosaic.version = 11 : i64} {
  func.func @_matmul_kernel(%arg0: i32, %arg1: memref<32x256xf32, #tpu.memory_space<vmem>>, %arg2: memref<256x128xf32, #tpu.memory_space<vmem>>, %arg3: memref<32x128xf32, #tpu.memory_space<vmem>>) attributes {dimension_semantics = [#tpu.dimension_semantics<parallel>], iteration_bounds = array<i64: 1>, scalar_prefetch = 0 : i64, scratch_operands = 0 : i64, tpu.core_type = #tpu.core_type<tc>, window_params = [{transform_indices = @transform_0, window_bounds = array<i64: 32, 256>}, {pipeline_mode = #tpu.pipeline_mode<synchronous>, transform_indices = @transform_1, window_bounds = array<i64: 256, 128>}, {transform_indices = @transform_2, window_bounds = array<i64: 32, 128>}]} {
    %c0 = arith.constant 0 : index
    %c0_0 = arith.constant 0 : index
    %0 = vector.load %arg1[%c0, %c0_0] : memref<32x256xf32, #tpu.memory_space<vmem>>, vector<32x256xf32>
    %c0_1 = arith.constant 0 : index
    %c0_2 = arith.constant 0 : index
    %1 = vector.load %arg2[%c0_1, %c0_2] : memref<256x128xf32, #tpu.memory_space<vmem>>, vector<256x128xf32>
    %cst = arith.constant dense<0.000000e+00> : vector<32x128xf32>
    %2 = tpu.matmul %0, %1, %cst {dimension_numbers = #tpu.dot_dimension_numbers<[1], [0], [0], [1], [0, 0, 1, 1], [], []>} : vector<32x256xf32>, vector<256x128xf32>, vector<32x128xf32> -> vector<32x128xf32>
    %c0_3 = arith.constant 0 : index
    %c0_4 = arith.constant 0 : index
    %3 = vector.load %arg3[%c0_3, %c0_4] : memref<32x128xf32, #tpu.memory_space<vmem>>, vector<32x128xf32>
    tpu.vector_store %arg3[%c0_3, %c0_4], %2 {strides = array<i32>} : memref<32x128xf32, #tpu.memory_space<vmem>>, vector<32x128xf32>,
    return
  }
  func.func @transform_0(%arg0: i32) -> (i32, i32) {
    %c0_i32 = arith.constant 0 : i32
    %c0_i32_0 = arith.constant 0 : i32
    return %arg0, %c0_i32 : i32, i32
  }
  func.func @transform_1(%arg0: i32) -> (i32, i32) {
    %c0_i32 = arith.constant 0 : i32
    %c0_i32_0 = arith.constant 0 : i32
    %c0_i32_1 = arith.constant 0 : i32
    return %c0_i32, %c0_i32_0 : i32, i32
  }
  func.func @transform_2(%arg0: i32) -> (i32, i32) {
    %c0_i32 = arith.constant 0 : i32
    %c0_i32_0 = arith.constant 0 : i32
    return %arg0, %c0_i32 : i32, i32
  }
}

</mosaic_0001>

<bundles_post_ra>
// kernel: focal_conv2d.1
= control target key start
LH: loop header
LB: loop body
LE: loop exit
PB: predicated region body
PF: predicated region fallthrough
CT: control target
= control target key end

     0   :  { %s383_s1 = inlined_call_operand.vmem [shape: f32[256,128], index: 1, kind: input, shape index: {}]   ;;  %s384_s0 = inlined_call_operand.vmem [shape: f32[32,256], index: 0, kind: input, shape index: {}]   ;;  %s385_s2 = inlined_call_operand.vmem [shape: f32[32,128], index: 2, kind: output, shape index: {}]  }
   0x1   :  { %v35_v0 = vld [vmem:[%s383_s1 + $0x80] sm:$0xff]  ;;  %v36_v1 = vld [vmem:[%s383_s1 + $0x88] sm:$0xff]  ;;  %v37_v5 = vld [vmem:[%s383_s1 + $0x90] sm:$0xff] }
   0x2   :  { %v19_v2 = vld [vmem:[%s383_s1] sm:$0xff]  ;;  %v188_v3 = vpack.c.bf16 %v36_v1, %v35_v0  ;;  %v20_v4 = vld [vmem:[%s383_s1 + $0x8] sm:$0xff]  ;;  %v38_v6 = vld [vmem:[%s383_s1 + $0x98] sm:$0xff] }
   0x3   :  { %v190_v7 = vpack.c.bf16 %v20_v4, %v19_v2  ;;  %v192_v8 = vpack.c.bf16 %v38_v6, %v37_v5  ;;  %v21_v9 = vld [vmem:[%s383_s1 + $0x10] sm:$0xff]  ;;  %v22_v10 = vld [vmem:[%s383_s1 + $0x18] sm:$0xff]  ;;  %v39_v11 = vld [vmem:[%s383_s1 + $0xa0] sm:$0xff] }
   0x4   :  { %189 = vmatprep.subr.bf16.mxu0 %v188_v3  ;;  %220 = vmatprep.subr.bf16.mxu1 %v188_v3  ;;  %v40_v12 = vld [vmem:[%s383_s1 + $0xa8] sm:$0xff]  ;;  %v194_v13 = vpack.c.bf16 %v22_v10, %v21_v9  ;;  %v23_v15 = vld [vmem:[%s383_s1 + $0x20] sm:$0xff]  ;;  %v41_v17 = vld [vmem:[%s383_s1 + $0xb0] sm:$0xff] }
   0x5   :  { %191 = vmatpush3.bf16.msra.mxu0 %v190_v7  ;;  %228 = vmatpush3.bf16.msra.mxu1 %v190_v7  ;;  %v196_v14 = vpack.c.bf16 %v40_v12, %v39_v11  ;;  %v24_v16 = vld [vmem:[%s383_s1 + $0x28] sm:$0xff]  ;;  %v42_v18 = vld [vmem:[%s383_s1 + $0xb8] sm:$0xff]  ;;  %v25_v21 = vld [vmem:[%s383_s1 + $0x30] sm:$0xff] }
   0x6   :  { %193 = vmatprep.subr.bf16.mxu0 %v192_v8  ;;  %221 = vmatprep.subr.bf16.mxu1 %v192_v8  ;;  %v198_v19 = vpack.c.bf16 %v24_v16, %v23_v15  ;;  %v200_v20 = vpack.c.bf16 %v42_v18, %v41_v17  ;;  %v26_v22 = vld [vmem:[%s383_s1 + $0x38] sm:$0xff]  ;;  %v43_v23 = vld [vmem:[%s383_s1 + $0xc0] sm:$0xff]  ;;  %v44_v24 = vld [vmem:[%s383_s1 + $0xc8] sm:$0xff] }
   0x7   :  { %v12_v25 = vld [vmem:[%s384_s0 + $0x8] sm:$0xff]  ;;  %v202_v27 = vpack.c.bf16 %v26_v22, %v25_v21  ;;  %v204_v28 = vpack.c.bf16 %v44_v24, %v43_v23  ;;  %v27_v29 = vld [vmem:[%s383_s1 + $0x40] sm:$0xff]  ;;  %v45_v31 = vld [vmem:[%s383_s1 + $0xd0] sm:$0xff] }
   0x8   :  { %115 = vmatprep.mubr.f32.mxu0 %v12_v25  ;;  %v16_v26 = vld [vmem:[%s384_s0 + $0x28] sm:$0xff]  ;;  %v46_v32 = vld [vmem:[%s383_s1 + $0xd8] sm:$0xff]  ;;  %v29_v35 = vld [vmem:[%s383_s1 + $0x50] sm:$0xff] }
   0x9   :  { %195 = vmatpush3.bf16.msra.mxu0 %v194_v13  ;;  %229 = vmatpush3.bf16.msra.mxu1 %v194_v13  ;;  %v28_v30 = vld [vmem:[%s383_s1 + $0x48] sm:$0xff]  ;;  %v208_v34 = vpack.c.bf16 %v46_v32, %v45_v31  ;;  %v30_v36 = vld [vmem:[%s383_s1 + $0x58] sm:$0xff]  ;;  %v47_v37 = vld [vmem:[%s383_s1 + $0xe0] sm:$0xff] }
   0xa   :  { %197 = vmatprep.subr.bf16.mxu0 %v196_v14  ;;  %222 = vmatprep.subr.bf16.mxu1 %v196_v14  ;;  %v206_v33 = vpack.c.bf16 %v28_v30, %v27_v29  ;;  %v48_v38 = vld [vmem:[%s383_s1 + $0xe8] sm:$0xff]  ;;  %v210_v39 = vpack.c.bf16 %v30_v36, %v29_v35  ;;  %v31_v41 = vld [vmem:[%s383_s1 + $0x60] sm:$0xff]  ;;  %v49_v43 = vld [vmem:[%s383_s1 + $0xf0] sm:$0xff] }
   0xb   :  { %125 = vmatprep.mubr.f32.mxu1 %v16_v26  ;;  %v212_v40 = vpack.c.bf16 %v48_v38, %v47_v37  ;;  %v32_v42 = vld [vmem:[%s383_s1 + $0x68] sm:$0xff]  ;;  %v50_v44 = vld [vmem:[%s383_s1 + $0xf8] sm:$0xff]  ;;  %v33_v47 = vld [vmem:[%s383_s1 + $0x70] sm:$0xff] }
   0xc   :  { %v214_v45 = vpack.c.bf16 %v32_v42, %v31_v41  ;;  %v216_v46 = vpack.c.bf16 %v50_v44, %v49_v43  ;;  %v34_v48 = vld [vmem:[%s383_s1 + $0x78] sm:$0xff]  ;;  %v11_v50 = vld [vmem:[%s384_s0] sm:$0xff]  ;;  %v13_v54 = vld [vmem:[%s384_s0 + $0x10] sm:$0xff] }
   0xd   :  { %199 = vmatpush3.bf16.msra.mxu0 %v198_v19  ;;  %230 = vmatpush3.bf16.msra.mxu1 %v198_v19  ;;  %v218_v49 = vpack.c.bf16 %v34_v48, %v33_v47  ;;  %v15_v51 = vld [vmem:[%s384_s0 + $0x20] sm:$0xff]  ;;  %v14_v52 = vld [vmem:[%s384_s0 + $0x18] sm:$0xff]  ;;  %v17_v55 = vld [vmem:[%s384_s0 + $0x30] sm:$0xff] }
   0xe   :  { %201 = vmatprep.subr.bf16.mxu0 %v200_v20  ;;  %223 = vmatprep.subr.bf16.mxu1 %v200_v20  ;;  %v18_v53 = vld [vmem:[%s384_s0 + $0x38] sm:$0xff] }
  0x11   :  { %203 = vmatpush3.bf16.msra.mxu0 %v202_v27  ;;  %231 = vmatpush3.bf16.msra.mxu1 %v202_v27 }
  0x12   :  { %205 = vmatprep.subr.bf16.mxu0 %v204_v28  ;;  %224 = vmatprep.subr.bf16.mxu1 %v204_v28 }
  0x15   :  { %207 = vmatpush3.bf16.msra.mxu0 %v206_v33  ;;  %232 = vmatpush3.bf16.msra.mxu1 %v206_v33 }
  0x16   :  { %209 = vmatprep.subr.bf16.mxu0 %v208_v34  ;;  %225 = vmatprep.subr.bf16.mxu1 %v208_v34 }
  0x19   :  { %211 = vmatpush3.bf16.msra.mxu0 %v210_v39  ;;  %233 = vmatpush3.bf16.msra.mxu1 %v210_v39 }
  0x1a   :  { %213 = vmatprep.subr.bf16.mxu0 %v212_v40  ;;  %226 = vmatprep.subr.bf16.mxu1 %v212_v40 }
  0x1d   :  { %215 = vmatpush3.bf16.msra.mxu0 %v214_v45  ;;  %234 = vmatpush3.bf16.msra.mxu1 %v214_v45 }
  0x1e   :  { %217 = vmatprep.subr.bf16.mxu0 %v216_v46  ;;  %227 = vmatprep.subr.bf16.mxu1 %v216_v46 }
  0x21   :  { %219 = vmatpush3.bf16.msra.mxu0 %v218_v49  ;;  %235 = vmatpush3.bf16.msra.mxu1 %v218_v49 }
  0x24   :  { %116 = vmatmul.mubr.f32.vlgmr.msra.gmra.mrb[0].mxu0 %v11_v50  ;;  %126 = vmatmul.mubr.f32.vlgmr.msra.gmra.mrb[0].mxu1 %v15_v51 }
  0x25   :  { %120 = vmatprep.mubr.f32.mxu0 %v14_v52  ;;  %130 = vmatprep.mubr.f32.mxu1 %v18_v53 }
  0x28   :  { %121 = vmatmul.mubr.f32.gmra.mrb[2].mxu0 %v13_v54  ;;  %131 = vmatmul.mubr.f32.gmra.mrb[2].mxu1 %v17_v55 }
  0xf7   :  { %v176_v56 = vpop.f32.mrb[0].mxu0  ;;  %v182_v57 = vpop.f32.mrb[0].mxu1 }
  0xf8   :  { %v177_v58 = vpop.f32.mrb[1].mxu0  ;;  %v183_v59 = vpop.f32.mrb[1].mxu1 }
  0xf9   :  { %v178_v60 = vadd.f32 %v177_v58, %v176_v56  ;;  %v184_v61 = vadd.f32 %v183_v59, %v182_v57 }
  0xfb   :  { %136 = vst [vmem:[%s385_s2] sm:$0xff] %v178_v60  ;;  %138 = vst [vmem:[%s385_s2 + $0x10] sm:$0xff] %v184_v61  ;;  %v179_v62 = vpop.f32.mrb[2].mxu0  ;;  %v185_v63 = vpop.f32.mrb[2].mxu1 }
  0xfc   :  { %v180_v0 = vpop.f32.mrb[3].mxu0  ;;  %v186_v1 = vpop.f32.mrb[3].mxu1 }
  0xfd   :  { %v181_v2 = vadd.f32 %v180_v0, %v179_v62  ;;  %v187_v3 = vadd.f32 %v186_v1, %v185_v63 }
  0xff   :  { %137 = vst [vmem:[%s385_s2 + $0x8] sm:$0xff] %v181_v2  ;;  %139 = vst [vmem:[%s385_s2 + $0x18] sm:$0xff] %v187_v3 }

</bundles_post_ra>
